<compile_context>
chip_gen: v5e
topology: v5e:2x2
jax: 0.10.0
libtpu: 0.0.40
codegen_flags: <defaults>
</compile_context>

<pallas_src>
import functools

import jax
import jax.numpy as jnp
from jax.experimental import pallas as pl
from jax.experimental.pallas import tpu as pltpu


# --------------------------- Fused RNN + FC kernel ---------------------------
def _fused_rnn_fc_kernel(*refs, B, T, num_layers):
    """Fused multi-layer tanh-RNN + Linear head.

    refs layout (inputs, outputs, scratch):
      [0]                    x_ref    (T*B, D)  time-major flattened input
      [3*l+1 .. 3*l+3]       layer l: wih_t (D_l, H), bias (1, H), whh_t (H, H)
      [3*L+1], [3*L+2]       fc_w_t (H, O), fc_b (1, O)
      [3*L+3]                o_ref    (B, O)    output
      [3*L+4]                seq_ref  (T*B, H)  VMEM scratch (pre-acts / hidden seq)
    """
    x_ref = refs[0]
    fcw_ref = refs[3 * num_layers + 1]
    fcb_ref = refs[3 * num_layers + 2]
    o_ref = refs[3 * num_layers + 3]
    seq_ref = refs[3 * num_layers + 4]

    x = x_ref[...]  # (T*B, D_in), time-major: row t*B + b  <->  (t, b)
    for layer in range(num_layers):
        wih_ref = refs[3 * layer + 1]
        b_ref = refs[3 * layer + 2]
        whh_ref = refs[3 * layer + 3]
        H = whh_ref.shape[0]

        # (1) Hoisted input projection: ONE MXU matmul covering all T steps.
        seq_ref[...] = (
            jnp.dot(x, wih_ref[...], preferred_element_type=jnp.float32)
            + b_ref[...]
        )

        # (2) Sequential recurrence (inherently serial): h @ Whh + pre[t], tanh.
        #     T is small and static, so the loop fully unrolls at trace time.
        whh = whh_ref[...]
        h = jnp.zeros((B, H), dtype=jnp.float32)
        for t in range(T):
            h = jnp.tanh(
                seq_ref[t * B:(t + 1) * B, :]
                + jnp.dot(h, whh, preferred_element_type=jnp.float32)
            )
            seq_ref[t * B:(t + 1) * B, :] = h  # overwrite pre-act with hidden state

        if layer + 1 < num_layers:
            x = seq_ref[...]  # (T*B, H): this layer's output feeds the next layer

    # (3) FC head on only the B rows that survive `y.reshape(T, B, -1)[-1]`
    #     (batch-first flat rows B*T-B .. B*T-1 of the (B*T, H) activation).
    # TODO(synk): the reference model's reshape(T, B, -1)[-1] is a memory
    # reinterpretation (NOT "last timestep per batch"); reproduced exactly here.
    fcw = fcw_ref[...]
    fcb = fcb_ref[...]
    for i, r in enumerate(range(B * T - B, B * T)):
        b_idx, t_idx = divmod(r, T)           # batch-first flat row r = b*T + t
        src = t_idx * B + b_idx               # its row in the time-major sequence
        row = seq_ref[src:src + 1, :]         # (1, H)
        o_ref[i:i + 1, :] = (
            jnp.dot(row, fcw, preferred_element_type=jnp.float32) + fcb
        ).astype(o_ref.dtype)


# -------------------------------- Forward ------------------------------------
@jax.jit
def my_lstm_forward(x, params):
    """Reproduces MyLSTM.forward: RNN(tanh) -> dropout(0) -> Linear -> reshape(T,B,-1)[-1]."""
    B, T, D = x.shape
    num_layers = len(params["rnn"])
    H = params["rnn"][0][2].shape[0]
    O = params["fc_w_t"].shape[1]

    # Time-major flatten so the recurrence reads contiguous (B, H) row blocks
    # per step. (Tiny op: B*T*D elements; weights need no transpose here.)
    x_tm = jnp.transpose(x, (1, 0, 2)).reshape(T * B, D).astype(jnp.float32)

    args = [x_tm]
    in_specs = [pl.BlockSpec((T * B, D), lambda: (0, 0))]
    for (wih_t, b_row, whh_t) in params["rnn"]:
        args += [wih_t, b_row, whh_t]
        in_specs += [
            pl.BlockSpec(wih_t.shape, lambda: (0, 0)),
            pl.BlockSpec(b_row.shape, lambda: (0, 0)),
            pl.BlockSpec(whh_t.shape, lambda: (0, 0)),
        ]
    args += [params["fc_w_t"], params["fc_b"]]
    in_specs += [
        pl.BlockSpec(params["fc_w_t"].shape, lambda: (0, 0)),
        pl.BlockSpec(params["fc_b"].shape, lambda: (0, 0)),
    ]

    kernel = functools.partial(
        _fused_rnn_fc_kernel, B=B, T=T, num_layers=num_layers
    )
    return pl.pallas_call(
        kernel,
        out_shape=jax.ShapeDtypeStruct((B, O), jnp.float32),
        in_specs=in_specs,
        out_specs=pl.BlockSpec((B, O), lambda: (0, 0)),
        scratch_shapes=[pltpu.VMEM((T * B, H), jnp.float32)],
    )(*args)


# ------------------------------ Param init -----------------------------------
def init_params(key, input_size, hidden_size, num_layers, output_size):
    """PyTorch-default-style init U(-k, k), k = 1/sqrt(H); weights stored
    pre-transposed (in, out) and RNN biases pre-summed for the kernel."""
    k_rnn = 1.0 / jnp.sqrt(jnp.float32(hidden_size))
    rnn_params = []
    for layer in range(num_layers):
        d_in = input_size if layer == 0 else hidden_size
        key, k1, k2, k3, k4 = jax.random.split(key, 5)
        wih = jax.random.uniform(k1, (hidden_size, d_in), jnp.float32, -k_rnn, k_rnn)
        whh = jax.random.uniform(k2, (hidden_size, hidden_size), jnp.float32, -k_rnn, k_rnn)
        bih = jax.random.uniform(k3, (hidden_size,), jnp.float32, -k_rnn, k_rnn)
        bhh = jax.random.uniform(k4, (hidden_size,), jnp.float32, -k_rnn, k_rnn)
        rnn_params.append((wih.T, (bih + bhh)[None, :], whh.T))

    k_fc = 1.0 / jnp.sqrt(jnp.float32(hidden_size))
    key, k1, k2 = jax.random.split(key, 3)
    fc_w = jax.random.uniform(k1, (output_size, hidden_size), jnp.float32, -k_fc, k_fc)
    fc_b = jax.random.uniform(k2, (output_size,), jnp.float32, -k_fc, k_fc)
    return {"rnn": rnn_params, "fc_w_t": fc_w.T, "fc_b": fc_b[None, :]}


# --------------------------- Pure-JAX reference -------------------------------
def _reference_forward(x, params):
    B, T, _ = x.shape
    h_seq = x.astype(jnp.float32)  # (B, T, D)
    for (wih_t, b_row, whh_t) in params["rnn"]:
        H = whh_t.shape[0]
        h = jnp.zeros((B, H), jnp.float32)
        outs = []
        for t in range(T):
            h = jnp.tanh(h_seq[:, t, :] @ wih_t + b_row + h @ whh_t)
            outs.append(h)
        h_seq = jnp.stack(outs, axis=1)  # (B, T, H)
    y = h_seq.reshape(B * T, -1) @ params["fc_w_t"] + params["fc_b"]  # (B*T, O)
    y = y.reshape(B, T, -1).reshape(T, B, -1)  # exact PyTorch reshape semantics
    return y[-1]


if __name__ == "__main__":
    B, T = 2, 8
    input_size, hidden_size, num_layers, output_size = 4, 32, 2, 4

    key = jax.random.PRNGKey(0)
    key, kx = jax.random.split(key)
    x = jax.random.normal(kx, (B, T, input_size), jnp.float32)
    params = init_params(key, input_size, hidden_size, num_layers, output_size)

    out = my_lstm_forward(x, params)
    out = jax.block_until_ready(out)
    assert out.shape == (B, output_size), out.shape

    ref = jax.block_until_ready(_reference_forward(x, params))
    assert jnp.allclose(out, ref, rtol=1e-3, atol=1e-3), (out, ref)

    print("KERNEL_OK")
</pallas_src>

<mosaic_0001>
module attributes {stable_mosaic.version = 11 : i64} {
  func.func @_fused_rnn_fc_kernel(%arg0: memref<16x4xf32, #tpu.memory_space<vmem>>, %arg1: memref<4x32xf32, #tpu.memory_space<vmem>>, %arg2: memref<1x32xf32, #tpu.memory_space<vmem>>, %arg3: memref<32x32xf32, #tpu.memory_space<vmem>>, %arg4: memref<32x32xf32, #tpu.memory_space<vmem>>, %arg5: memref<1x32xf32, #tpu.memory_space<vmem>>, %arg6: memref<32x32xf32, #tpu.memory_space<vmem>>, %arg7: memref<32x4xf32, #tpu.memory_space<vmem>>, %arg8: memref<1x4xf32, #tpu.memory_space<vmem>>, %arg9: memref<2x4xf32, #tpu.memory_space<vmem>>, %arg10: memref<16x32xf32, #tpu.memory_space<vmem>>) attributes {dimension_semantics = [], scalar_prefetch = 0 : i64, scratch_operands = 1 : i64, tpu.core_type = #tpu.core_type<tc>} {
    %c0 = arith.constant 0 : index
    %c0_0 = arith.constant 0 : index
    %0 = vector.load %arg0[%c0, %c0_0] : memref<16x4xf32, #tpu.memory_space<vmem>>, vector<16x4xf32>
    %c0_1 = arith.constant 0 : index
    %c0_2 = arith.constant 0 : index
    %1 = vector.load %arg1[%c0_1, %c0_2] : memref<4x32xf32, #tpu.memory_space<vmem>>, vector<4x32xf32>
    %cst = arith.constant dense<0.000000e+00> : vector<16x32xf32>
    %2 = tpu.matmul %0, %1, %cst {dimension_numbers = #tpu.dot_dimension_numbers<[1], [0], [0], [1], [0, 0, 1, 1], [], []>} : vector<16x4xf32>, vector<4x32xf32>, vector<16x32xf32> -> vector<16x32xf32>
    %c0_3 = arith.constant 0 : index
    %c0_4 = arith.constant 0 : index
    %3 = vector.load %arg2[%c0_3, %c0_4] : memref<1x32xf32, #tpu.memory_space<vmem>>, vector<1x32xf32>
    %4 = vector.broadcast %3 : vector<1x32xf32> to vector<16x32xf32>
    %5 = arith.addf %2, %4 : vector<16x32xf32>
    %c0_5 = arith.constant 0 : index
    %c0_6 = arith.constant 0 : index
    %6 = vector.load %arg10[%c0_5, %c0_6] : memref<16x32xf32, #tpu.memory_space<vmem>>, vector<16x32xf32>
    tpu.vector_store %arg10[%c0_5, %c0_6], %5 {strides = array<i32>} : memref<16x32xf32, #tpu.memory_space<vmem>>, vector<16x32xf32>,
    %c0_7 = arith.constant 0 : index
    %c0_8 = arith.constant 0 : index
    %7 = vector.load %arg3[%c0_7, %c0_8] : memref<32x32xf32, #tpu.memory_space<vmem>>, vector<32x32xf32>
    %cst_9 = arith.constant 0.000000e+00 : f32
    %8 = vector.broadcast %cst_9 : f32 to vector<2x32xf32>
    %c0_10 = arith.constant 0 : index
    %c0_11 = arith.constant 0 : index
    %9 = vector.load %arg10[%c0_10, %c0_11] : memref<16x32xf32, #tpu.memory_space<vmem>>, vector<2x32xf32>
    %cst_12 = arith.constant dense<0.000000e+00> : vector<2x32xf32>
    %10 = tpu.matmul %8, %7, %cst_12 {dimension_numbers = #tpu.dot_dimension_numbers<[1], [0], [0], [1], [0, 0, 1, 1], [], []>} : vector<2x32xf32>, vector<32x32xf32>, vector<2x32xf32> -> vector<2x32xf32>
    %11 = arith.addf %9, %10 : vector<2x32xf32>
    %12 = math.tanh %11 : vector<2x32xf32>
    %c0_13 = arith.constant 0 : index
    %c0_14 = arith.constant 0 : index
    %13 = vector.load %arg10[%c0_13, %c0_14] : memref<16x32xf32, #tpu.memory_space<vmem>>, vector<2x32xf32>
    tpu.vector_store %arg10[%c0_13, %c0_14], %12 {strides = array<i32>} : memref<16x32xf32, #tpu.memory_space<vmem>>, vector<2x32xf32>,
    %c2 = arith.constant 2 : index
    %c0_15 = arith.constant 0 : index
    %14 = vector.load %arg10[%c2, %c0_15] : memref<16x32xf32, #tpu.memory_space<vmem>>, vector<2x32xf32>
    %cst_16 = arith.constant dense<0.000000e+00> : vector<2x32xf32>
    %15 = tpu.matmul %12, %7, %cst_16 {dimension_numbers = #tpu.dot_dimension_numbers<[1], [0], [0], [1], [0, 0, 1, 1], [], []>} : vector<2x32xf32>, vector<32x32xf32>, vector<2x32xf32> -> vector<2x32xf32>
    %16 = arith.addf %14, %15 : vector<2x32xf32>
    %17 = math.tanh %16 : vector<2x32xf32>
    %c2_17 = arith.constant 2 : index
    %c0_18 = arith.constant 0 : index
    %18 = vector.load %arg10[%c2_17, %c0_18] : memref<16x32xf32, #tpu.memory_space<vmem>>, vector<2x32xf32>
    tpu.vector_store %arg10[%c2_17, %c0_18], %17 {strides = array<i32>} : memref<16x32xf32, #tpu.memory_space<vmem>>, vector<2x32xf32>,
    %c4 = arith.constant 4 : index
    %c0_19 = arith.constant 0 : index
    %19 = vector.load %arg10[%c4, %c0_19] : memref<16x32xf32, #tpu.memory_space<vmem>>, vector<2x32xf32>
    %cst_20 = arith.constant dense<0.000000e+00> : vector<2x32xf32>
    %20 = tpu.matmul %17, %7, %cst_20 {dimension_numbers = #tpu.dot_dimension_numbers<[1], [0], [0], [1], [0, 0, 1, 1], [], []>} : vector<2x32xf32>, vector<32x32xf32>, vector<2x32xf32> -> vector<2x32xf32>
    %21 = arith.addf %19, %20 : vector<2x32xf32>
    %22 = math.tanh %21 : vector<2x32xf32>
    %c4_21 = arith.constant 4 : index
    %c0_22 = arith.constant 0 : index
    %23 = vector.load %arg10[%c4_21, %c0_22] : memref<16x32xf32, #tpu.memory_space<vmem>>, vector<2x32xf32>
    tpu.vector_store %arg10[%c4_21, %c0_22], %22 {strides = array<i32>} : memref<16x32xf32, #tpu.memory_space<vmem>>, vector<2x32xf32>,
    %c6 = arith.constant 6 : index
    %c0_23 = arith.constant 0 : index
    %24 = vector.load %arg10[%c6, %c0_23] : memref<16x32xf32, #tpu.memory_space<vmem>>, vector<2x32xf32>
    %cst_24 = arith.constant dense<0.000000e+00> : vector<2x32xf32>
    %25 = tpu.matmul %22, %7, %cst_24 {dimension_numbers = #tpu.dot_dimension_numbers<[1], [0], [0], [1], [0, 0, 1, 1], [], []>} : vector<2x32xf32>, vector<32x32xf32>, vector<2x32xf32> -> vector<2x32xf32>
    %26 = arith.addf %24, %25 : vector<2x32xf32>
    %27 = math.tanh %26 : vector<2x32xf32>
    %c6_25 = arith.constant 6 : index
    %c0_26 = arith.constant 0 : index
    %28 = vector.load %arg10[%c6_25, %c0_26] : memref<16x32xf32, #tpu.memory_space<vmem>>, vector<2x32xf32>
    tpu.vector_store %arg10[%c6_25, %c0_26], %27 {strides = array<i32>} : memref<16x32xf32, #tpu.memory_space<vmem>>, vector<2x32xf32>,
    %c8 = arith.constant 8 : index
    %c0_27 = arith.constant 0 : index
    %29 = vector.load %arg10[%c8, %c0_27] : memref<16x32xf32, #tpu.memory_space<vmem>>, vector<2x32xf32>
    %cst_28 = arith.constant dense<0.000000e+00> : vector<2x32xf32>
    %30 = tpu.matmul %27, %7, %cst_28 {dimension_numbers = #tpu.dot_dimension_numbers<[1], [0], [0], [1], [0, 0, 1, 1], [], []>} : vector<2x32xf32>, vector<32x32xf32>, vector<2x32xf32> -> vector<2x32xf32>
    %31 = arith.addf %29, %30 : vector<2x32xf32>
    %32 = math.tanh %31 : vector<2x32xf32>
    %c8_29 = arith.constant 8 : index
    %c0_30 = arith.constant 0 : index
    %33 = vector.load %arg10[%c8_29, %c0_30] : memref<16x32xf32, #tpu.memory_space<vmem>>, vector<2x32xf32>
    tpu.vector_store %arg10[%c8_29, %c0_30], %32 {strides = array<i32>} : memref<16x32xf32, #tpu.memory_space<vmem>>, vector<2x32xf32>,
    %c10 = arith.constant 10 : index
    %c0_31 = arith.constant 0 : index
    %34 = vector.load %arg10[%c10, %c0_31] : memref<16x32xf32, #tpu.memory_space<vmem>>, vector<2x32xf32>
    %cst_32 = arith.constant dense<0.000000e+00> : vector<2x32xf32>
    %35 = tpu.matmul %32, %7, %cst_32 {dimension_numbers = #tpu.dot_dimension_numbers<[1], [0], [0], [1], [0, 0, 1, 1], [], []>} : vector<2x32xf32>, vector<32x32xf32>, vector<2x32xf32> -> vector<2x32xf32>
    %36 = arith.addf %34, %35 : vector<2x32xf32>
    %37 = math.tanh %36 : vector<2x32xf32>
    %c10_33 = arith.constant 10 : index
    %c0_34 = arith.constant 0 : index
    %38 = vector.load %arg10[%c10_33, %c0_34] : memref<16x32xf32, #tpu.memory_space<vmem>>, vector<2x32xf32>
    tpu.vector_store %arg10[%c10_33, %c0_34], %37 {strides = array<i32>} : memref<16x32xf32, #tpu.memory_space<vmem>>, vector<2x32xf32>,
    %c12 = arith.constant 12 : index
    %c0_35 = arith.constant 0 : index
    %39 = vector.load %arg10[%c12, %c0_35] : memref<16x32xf32, #tpu.memory_space<vmem>>, vector<2x32xf32>
    %cst_36 = arith.constant dense<0.000000e+00> : vector<2x32xf32>
    %40 = tpu.matmul %37, %7, %cst_36 {dimension_numbers = #tpu.dot_dimension_numbers<[1], [0], [0], [1], [0, 0, 1, 1], [], []>} : vector<2x32xf32>, vector<32x32xf32>, vector<2x32xf32> -> vector<2x32xf32>
    %41 = arith.addf %39, %40 : vector<2x32xf32>
    %42 = math.tanh %41 : vector<2x32xf32>
    %c12_37 = arith.constant 12 : index
    %c0_38 = arith.constant 0 : index
    %43 = vector.load %arg10[%c12_37, %c0_38] : memref<16x32xf32, #tpu.memory_space<vmem>>, vector<2x32xf32>
    tpu.vector_store %arg10[%c12_37, %c0_38], %42 {strides = array<i32>} : memref<16x32xf32, #tpu.memory_space<vmem>>, vector<2x32xf32>,
    %c14 = arith.constant 14 : index
    %c0_39 = arith.constant 0 : index
    %44 = vector.load %arg10[%c14, %c0_39] : memref<16x32xf32, #tpu.memory_space<vmem>>, vector<2x32xf32>
    %cst_40 = arith.constant dense<0.000000e+00> : vector<2x32xf32>
    %45 = tpu.matmul %42, %7, %cst_40 {dimension_numbers = #tpu.dot_dimension_numbers<[1], [0], [0], [1], [0, 0, 1, 1], [], []>} : vector<2x32xf32>, vector<32x32xf32>, vector<2x32xf32> -> vector<2x32xf32>
    %46 = arith.addf %44, %45 : vector<2x32xf32>
    %47 = math.tanh %46 : vector<2x32xf32>
    %c14_41 = arith.constant 14 : index
    %c0_42 = arith.constant 0 : index
    %48 = vector.load %arg10[%c14_41, %c0_42] : memref<16x32xf32, #tpu.memory_space<vmem>>, vector<2x32xf32>
    tpu.vector_store %arg10[%c14_41, %c0_42], %47 {strides = array<i32>} : memref<16x32xf32, #tpu.memory_space<vmem>>, vector<2x32xf32>,
    %c0_43 = arith.constant 0 : index
    %c0_44 = arith.constant 0 : index
    %49 = vector.load %arg10[%c0_43, %c0_44] : memref<16x32xf32, #tpu.memory_space<vmem>>, vector<16x32xf32>
    %c0_45 = arith.constant 0 : index
    %c0_46 = arith.constant 0 : index
    %50 = vector.load %arg4[%c0_45, %c0_46] : memref<32x32xf32, #tpu.memory_space<vmem>>, vector<32x32xf32>
    %cst_47 = arith.constant dense<0.000000e+00> : vector<16x32xf32>
    %51 = tpu.matmul %49, %50, %cst_47 {dimension_numbers = #tpu.dot_dimension_numbers<[1], [0], [0], [1], [0, 0, 1, 1], [], []>} : vector<16x32xf32>, vector<32x32xf32>, vector<16x32xf32> -> vector<16x32xf32>
    %c0_48 = arith.constant 0 : index
    %c0_49 = arith.constant 0 : index
    %52 = vector.load %arg5[%c0_48, %c0_49] : memref<1x32xf32, #tpu.memory_space<vmem>>, vector<1x32xf32>
    %53 = vector.broadcast %52 : vector<1x32xf32> to vector<16x32xf32>
    %54 = arith.addf %51, %53 : vector<16x32xf32>
    %c0_50 = arith.constant 0 : index
    %c0_51 = arith.constant 0 : index
    %55 = vector.load %arg10[%c0_50, %c0_51] : memref<16x32xf32, #tpu.memory_space<vmem>>, vector<16x32xf32>
    tpu.vector_store %arg10[%c0_50, %c0_51], %54 {strides = array<i32>} : memref<16x32xf32, #tpu.memory_space<vmem>>, vector<16x32xf32>,
    %c0_52 = arith.constant 0 : index
    %c0_53 = arith.constant 0 : index
    %56 = vector.load %arg6[%c0_52, %c0_53] : memref<32x32xf32, #tpu.memory_space<vmem>>, vector<32x32xf32>
    %cst_54 = arith.constant 0.000000e+00 : f32
    %57 = vector.broadcast %cst_54 : f32 to vector<2x32xf32>
    %c0_55 = arith.constant 0 : index
    %c0_56 = arith.constant 0 : index
    %58 = vector.load %arg10[%c0_55, %c0_56] : memref<16x32xf32, #tpu.memory_space<vmem>>, vector<2x32xf32>
    %cst_57 = arith.constant dense<0.000000e+00> : vector<2x32xf32>
    %59 = tpu.matmul %57, %56, %cst_57 {dimension_numbers = #tpu.dot_dimension_numbers<[1], [0], [0], [1], [0, 0, 1, 1], [], []>} : vector<2x32xf32>, vector<32x32xf32>, vector<2x32xf32> -> vector<2x32xf32>
    %60 = arith.addf %58, %59 : vector<2x32xf32>
    %61 = math.tanh %60 : vector<2x32xf32>
    %c0_58 = arith.constant 0 : index
    %c0_59 = arith.constant 0 : index
    %62 = vector.load %arg10[%c0_58, %c0_59] : memref<16x32xf32, #tpu.memory_space<vmem>>, vector<2x32xf32>
    tpu.vector_store %arg10[%c0_58, %c0_59], %61 {strides = array<i32>} : memref<16x32xf32, #tpu.memory_space<vmem>>, vector<2x32xf32>,
    %c2_60 = arith.constant 2 : index
    %c0_61 = arith.constant 0 : index
    %63 = vector.load %arg10[%c2_60, %c0_61] : memref<16x32xf32, #tpu.memory_space<vmem>>, vector<2x32xf32>
    %cst_62 = arith.constant dense<0.000000e+00> : vector<2x32xf32>
    %64 = tpu.matmul %61, %56, %cst_62 {dimension_numbers = #tpu.dot_dimension_numbers<[1], [0], [0], [1], [0, 0, 1, 1], [], []>} : vector<2x32xf32>, vector<32x32xf32>, vector<2x32xf32> -> vector<2x32xf32>
    %65 = arith.addf %63, %64 : vector<2x32xf32>
    %66 = math.tanh %65 : vector<2x32xf32>
    %c2_63 = arith.constant 2 : index
    %c0_64 = arith.constant 0 : index
    %67 = vector.load %arg10[%c2_63, %c0_64] : memref<16x32xf32, #tpu.memory_space<vmem>>, vector<2x32xf32>
    tpu.vector_store %arg10[%c2_63, %c0_64], %66 {strides = array<i32>} : memref<16x32xf32, #tpu.memory_space<vmem>>, vector<2x32xf32>,
    %c4_65 = arith.constant 4 : index
    %c0_66 = arith.constant 0 : index
    %68 = vector.load %arg10[%c4_65, %c0_66] : memref<16x32xf32, #tpu.memory_space<vmem>>, vector<2x32xf32>
    %cst_67 = arith.constant dense<0.000000e+00> : vector<2x32xf32>
    %69 = tpu.matmul %66, %56, %cst_67 {dimension_numbers = #tpu.dot_dimension_numbers<[1], [0], [0], [1], [0, 0, 1, 1], [], []>} : vector<2x32xf32>, vector<32x32xf32>, vector<2x32xf32> -> vector<2x32xf32>
    %70 = arith.addf %68, %69 : vector<2x32xf32>
    %71 = math.tanh %70 : vector<2x32xf32>
    %c4_68 = arith.constant 4 : index
    %c0_69 = arith.constant 0 : index
    %72 = vector.load %arg10[%c4_68, %c0_69] : memref<16x32xf32, #tpu.memory_space<vmem>>, vector<2x32xf32>
    tpu.vector_store %arg10[%c4_68, %c0_69], %71 {strides = array<i32>} : memref<16x32xf32, #tpu.memory_space<vmem>>, vector<2x32xf32>,
    %c6_70 = arith.constant 6 : index
    %c0_71 = arith.constant 0 : index
    %73 = vector.load %arg10[%c6_70, %c0_71] : memref<16x32xf32, #tpu.memory_space<vmem>>, vector<2x32xf32>
    %cst_72 = arith.constant dense<0.000000e+00> : vector<2x32xf32>
    %74 = tpu.matmul %71, %56, %cst_72 {dimension_numbers = #tpu.dot_dimension_numbers<[1], [0], [0], [1], [0, 0, 1, 1], [], []>} : vector<2x32xf32>, vector<32x32xf32>, vector<2x32xf32> -> vector<2x32xf32>
    %75 = arith.addf %73, %74 : vector<2x32xf32>
    %76 = math.tanh %75 : vector<2x32xf32>
    %c6_73 = arith.constant 6 : index
    %c0_74 = arith.constant 0 : index
    %77 = vector.load %arg10[%c6_73, %c0_74] : memref<16x32xf32, #tpu.memory_space<vmem>>, vector<2x32xf32>
    tpu.vector_store %arg10[%c6_73, %c0_74], %76 {strides = array<i32>} : memref<16x32xf32, #tpu.memory_space<vmem>>, vector<2x32xf32>,
    %c8_75 = arith.constant 8 : index
    %c0_76 = arith.constant 0 : index
    %78 = vector.load %arg10[%c8_75, %c0_76] : memref<16x32xf32, #tpu.memory_space<vmem>>, vector<2x32xf32>
    %cst_77 = arith.constant dense<0.000000e+00> : vector<2x32xf32>
    %79 = tpu.matmul %76, %56, %cst_77 {dimension_numbers = #tpu.dot_dimension_numbers<[1], [0], [0], [1], [0, 0, 1, 1], [], []>} : vector<2x32xf32>, vector<32x32xf32>, vector<2x32xf32> -> vector<2x32xf32>
    %80 = arith.addf %78, %79 : vector<2x32xf32>
    %81 = math.tanh %80 : vector<2x32xf32>
    %c8_78 = arith.constant 8 : index
    %c0_79 = arith.constant 0 : index
    %82 = vector.load %arg10[%c8_78, %c0_79] : memref<16x32xf32, #tpu.memory_space<vmem>>, vector<2x32xf32>
    tpu.vector_store %arg10[%c8_78, %c0_79], %81 {strides = array<i32>} : memref<16x32xf32, #tpu.memory_space<vmem>>, vector<2x32xf32>,
    %c10_80 = arith.constant 10 : index
    %c0_81 = arith.constant 0 : index
    %83 = vector.load %arg10[%c10_80, %c0_81] : memref<16x32xf32, #tpu.memory_space<vmem>>, vector<2x32xf32>
    %cst_82 = arith.constant dense<0.000000e+00> : vector<2x32xf32>
    %84 = tpu.matmul %81, %56, %cst_82 {dimension_numbers = #tpu.dot_dimension_numbers<[1], [0], [0], [1], [0, 0, 1, 1], [], []>} : vector<2x32xf32>, vector<32x32xf32>, vector<2x32xf32> -> vector<2x32xf32>
    %85 = arith.addf %83, %84 : vector<2x32xf32>
    %86 = math.tanh %85 : vector<2x32xf32>
    %c10_83 = arith.constant 10 : index
    %c0_84 = arith.constant 0 : index
    %87 = vector.load %arg10[%c10_83, %c0_84] : memref<16x32xf32, #tpu.memory_space<vmem>>, vector<2x32xf32>
    tpu.vector_store %arg10[%c10_83, %c0_84], %86 {strides = array<i32>} : memref<16x32xf32, #tpu.memory_space<vmem>>, vector<2x32xf32>,
    %c12_85 = arith.constant 12 : index
    %c0_86 = arith.constant 0 : index
    %88 = vector.load %arg10[%c12_85, %c0_86] : memref<16x32xf32, #tpu.memory_space<vmem>>, vector<2x32xf32>
    %cst_87 = arith.constant dense<0.000000e+00> : vector<2x32xf32>
    %89 = tpu.matmul %86, %56, %cst_87 {dimension_numbers = #tpu.dot_dimension_numbers<[1], [0], [0], [1], [0, 0, 1, 1], [], []>} : vector<2x32xf32>, vector<32x32xf32>, vector<2x32xf32> -> vector<2x32xf32>
    %90 = arith.addf %88, %89 : vector<2x32xf32>
    %91 = math.tanh %90 : vector<2x32xf32>
    %c12_88 = arith.constant 12 : index
    %c0_89 = arith.constant 0 : index
    %92 = vector.load %arg10[%c12_88, %c0_89] : memref<16x32xf32, #tpu.memory_space<vmem>>, vector<2x32xf32>
    tpu.vector_store %arg10[%c12_88, %c0_89], %91 {strides = array<i32>} : memref<16x32xf32, #tpu.memory_space<vmem>>, vector<2x32xf32>,
    %c14_90 = arith.constant 14 : index
    %c0_91 = arith.constant 0 : index
    %93 = vector.load %arg10[%c14_90, %c0_91] : memref<16x32xf32, #tpu.memory_space<vmem>>, vector<2x32xf32>
    %cst_92 = arith.constant dense<0.000000e+00> : vector<2x32xf32>
    %94 = tpu.matmul %91, %56, %cst_92 {dimension_numbers = #tpu.dot_dimension_numbers<[1], [0], [0], [1], [0, 0, 1, 1], [], []>} : vector<2x32xf32>, vector<32x32xf32>, vector<2x32xf32> -> vector<2x32xf32>
    %95 = arith.addf %93, %94 : vector<2x32xf32>
    %96 = math.tanh %95 : vector<2x32xf32>
    %c14_93 = arith.constant 14 : index
    %c0_94 = arith.constant 0 : index
    %97 = vector.load %arg10[%c14_93, %c0_94] : memref<16x32xf32, #tpu.memory_space<vmem>>, vector<2x32xf32>
    tpu.vector_store %arg10[%c14_93, %c0_94], %96 {strides = array<i32>} : memref<16x32xf32, #tpu.memory_space<vmem>>, vector<2x32xf32>,
    %c0_95 = arith.constant 0 : index
    %c0_96 = arith.constant 0 : index
    %98 = vector.load %arg7[%c0_95, %c0_96] : memref<32x4xf32, #tpu.memory_space<vmem>>, vector<32x4xf32>
    %c0_97 = arith.constant 0 : index
    %c0_98 = arith.constant 0 : index
    %99 = vector.load %arg8[%c0_97, %c0_98] : memref<1x4xf32, #tpu.memory_space<vmem>>, vector<1x4xf32>
    %c13 = arith.constant 13 : index
    %c0_99 = arith.constant 0 : index
    %100 = vector.load %arg10[%c13, %c0_99] : memref<16x32xf32, #tpu.memory_space<vmem>>, vector<1x32xf32>
    %cst_100 = arith.constant dense<0.000000e+00> : vector<1x4xf32>
    %101 = tpu.matmul %100, %98, %cst_100 {dimension_numbers = #tpu.dot_dimension_numbers<[1], [0], [0], [1], [0, 0, 1, 1], [], []>} : vector<1x32xf32>, vector<32x4xf32>, vector<1x4xf32> -> vector<1x4xf32>
    %102 = arith.addf %101, %99 : vector<1x4xf32>
    %c0_101 = arith.constant 0 : index
    %c0_102 = arith.constant 0 : index
    %103 = vector.load %arg9[%c0_101, %c0_102] : memref<2x4xf32, #tpu.memory_space<vmem>>, vector<1x4xf32>
    tpu.vector_store %arg9[%c0_101, %c0_102], %102 {strides = array<i32>} : memref<2x4xf32, #tpu.memory_space<vmem>>, vector<1x4xf32>,
    %c15 = arith.constant 15 : index
    %c0_103 = arith.constant 0 : index
    %104 = vector.load %arg10[%c15, %c0_103] : memref<16x32xf32, #tpu.memory_space<vmem>>, vector<1x32xf32>
    %cst_104 = arith.constant dense<0.000000e+00> : vector<1x4xf32>
    %105 = tpu.matmul %104, %98, %cst_104 {dimension_numbers = #tpu.dot_dimension_numbers<[1], [0], [0], [1], [0, 0, 1, 1], [], []>} : vector<1x32xf32>, vector<32x4xf32>, vector<1x4xf32> -> vector<1x4xf32>
    %106 = arith.addf %105, %99 : vector<1x4xf32>
    %c1 = arith.constant 1 : index
    %c0_105 = arith.constant 0 : index
    %107 = vector.load %arg9[%c1, %c0_105] : memref<2x4xf32, #tpu.memory_space<vmem>>, vector<1x4xf32>
    tpu.vector_store %arg9[%c1, %c0_105], %106 {strides = array<i32>} : memref<2x4xf32, #tpu.memory_space<vmem>>, vector<1x4xf32>,
    return
  }
}

</mosaic_0001>

<bundles_post_ra>
// kernel: my_lstm_forward.1
= control target key start
LH: loop header
LB: loop body
LE: loop exit
PB: predicated region body
PF: predicated region fallthrough
CT: control target
= control target key end

     0   :  { %14 = vsyncpa [#allocation4], 0  ;;  %s994_s0 = inlined_call_operand.vmem [shape: f32[16,4], index: 0, kind: input, shape index: {}]   ;;  %s995_s1 = inlined_call_operand.vmem [shape: f32[4,32], index: 1, kind: input, shape index: {}]   ;;  %s996_s2 = inlined_call_operand.vmem [shape: f32[1,32], index: 2, kind: input, shape index: {}]   ;;  %s997_s3 = inlined_call_operand.vmem [shape: f32[32,32], index: 3, kind: input, shape index: {}]   ;;  %s998_s4 = inlined_call_operand.hbm [shape: f32[32,32], index: 4, kind: input, shape index: {}]   ;;  %s999_s5 = inlined_call_operand.vmem [shape: f32[1,32], index: 5, kind: input, shape index: {}]   ;;  %s1000_s6 = inlined_call_operand.hbm [shape: f32[32,32], index: 6, kind: input, shape index: {}]   ;;  %s1001_s7 = inlined_call_operand.vmem [shape: f32[32,4], index: 7, kind: input, shape index: {}]   ;;  %s1002_s8 = inlined_call_operand.vmem [shape: f32[1,4], index: 8, kind: input, shape index: {}]   ;;  %s1003_s9 = inlined_call_operand.hbm [shape: f32[2,4], index: 9, kind: output, shape index: {}]  }
   0x1   :  { %15 = vsyncpa [#allocation7], 0 }
   0x2   :  { %16 = vsyncpa [#allocation5], 0  ;;  %s29_s11 = sshll.u32 %s998_s4, 4  ;;  %s801_s12 = smov [#allocation3]   ;;  %s30_s11 = int_to_ptr.hbm [resolvable:$true] %s29_s11 }
   0x3   :  { %s31_s13 = sshll.u32 %s801_s12, 4  ;;  %s44_s16 = sshll.u32 %s1000_s6, 4  ;;  %s32_s13 = int_to_ptr.vmem [resolvable:$true] %s31_s13  ;;  %s45_s16 = int_to_ptr.hbm [resolvable:$true] %s44_s16 }
   0x4   :  { %s802_s17 = smov 128   ;;  %s803_s18 = smov 8  }
   0x5   :  { %37 = dma.hbm_to_vmem [thread:$0]  %s30_s11, 512, %s32_s13, [#allocation4], %s802_s17, %s802_s17, %s803_s18  }
   0x6   :  { %s804_s19 = smov [#allocation6]  }
   0x7   :  { %s46_s20 = sshll.u32 %s804_s19, 4  ;;  %s47_s20 = int_to_ptr.vmem [resolvable:$true] %s46_s20 }
   0x8   :  { %52 = dma.hbm_to_vmem [thread:$0]  %s45_s16, 512, %s47_s20, [#allocation7], %s802_s17, %s802_s17, %s803_s18  }
   0x9   :  { %795 = dma.done.wait [#allocation4], 512  }
   0xa   :  { %796 = vsyncadd [#allocation4], 4294966784 }
   0xb   :  { %797 = dma.done.wait [#allocation7], 512  }
   0xc   :  { %798 = vsyncadd [#allocation7], 4294966784  ;;  %vm79_vm0 = vcmask 1043456   ;;  %vm72_vm1 = vcmask 31744   ;;  %v67_v0 = vld [vmem:[%s995_s1] sm:$0xf] }
   0xd   :  { %v65_v1 = vld [vmem:[%s994_s0] sm:$0xff]  ;;  %v112_v2 = vld [vmem:[%s997_s3 + $0x18] sm:$0xff]  ;;  %662 = vmatpush.msk.msra.mxu0 %vm79_vm0, %v67_v0  ;;  %v111_v3 = vld [vmem:[%s997_s3 + $0x10] sm:$0xff]  ;;  %v805_v6 = vmov 0.0   ;;  %vm106_vm2 = vcmask 261120   ;;  %vm139_vm3 = vcmask 254976  }
   0xe   :  { %129 = vmatpush.msra.mxu1 %v112_v2  ;;  %663 = vmatmul.msk.f32.vlgmr.msra.gmra.mxu0 %vm72_vm1, %v65_v1  ;;  %v110_v4 = vld [vmem:[%s997_s3 + $0x8] sm:$0xff]  ;;  %v109_v5 = vld [vmem:[%s997_s3] sm:$0xff]  ;;  %v333_v25 = vld [vmem:[#allocation3 + $0x8] sm:$0xff]  ;;  %vm617_vm4 = vcmask 24576   ;;  %s806_s20 = smov [#allocation8]   ;;  %s651_s6 = sshll.u32 %s1003_s9, 4  ;;  %s652_s6 = int_to_ptr.hbm [resolvable:$true] %s651_s6 }
   0xf   :  { %157 = vmatpush.msra.mxu2 %v112_v2  ;;  %184 = vmatpush.msra.mxu3 %v112_v2  ;;  %v689_v7 = vld [vmem:[%s996_s2] ss:$0 sm:$0xff]  ;;  %v66_v22 = vld [vmem:[%s994_s0 + $0x8] sm:$0xff]  ;;  %v332_v26 = vld [vmem:[#allocation3] sm:$0xff]  ;;  %s649_s4 = sshll.u32 %s806_s20, 4  ;;  %s650_s4 = int_to_ptr.vmem [resolvable:$true] %s649_s4 }
  0x10   :  { %130 = vmatpush.msra.mxu1 %v111_v3  ;;  %292 = vmatpush.msrb.mxu0 %v112_v2  ;;  %v335_v23 = vld [vmem:[#allocation3 + $0x18] sm:$0xff]  ;;  %v334_v24 = vld [vmem:[#allocation3 + $0x10] sm:$0xff]  ;;  %v907_v36 = vld [vmem:[#allocation6 + $0x8] sm:$0xff] }
  0x11   :  { %158 = vmatpush.msra.mxu2 %v111_v3  ;;  %185 = vmatpush.msra.mxu3 %v111_v3  ;;  %v901_v34 = vld [vmem:[#allocation6 + $0x18] sm:$0xff]  ;;  %v903_v35 = vld [vmem:[#allocation6 + $0x10] sm:$0xff]  ;;  %v913_v37 = vld [vmem:[#allocation6] sm:$0xff] }
  0x12   :  { %131 = vmatpush.msra.mxu1 %v110_v4  ;;  %293 = vmatpush.msrb.mxu0 %v111_v3  ;;  %v928_v41 = vld [vmem:[%s999_s5] ss:$0 sm:$0xff] }
  0x13   :  { %159 = vmatpush.msra.mxu2 %v110_v4  ;;  %186 = vmatpush.msra.mxu3 %v110_v4 }
  0x14   :  { %132 = vmatpush.msra.mxu1 %v109_v5  ;;  %294 = vmatpush.msrb.mxu0 %v110_v4 }
  0x15   :  { %133 = vmatmul.f32.vlgmr.msra.gmra.mxu1 %v805_v6  ;;  %160 = vmatpush.msra.mxu2 %v109_v5 }
  0x16   :  { %187 = vmatpush.msra.mxu3 %v109_v5  ;;  %211 = vmatpush.msrb.mxu1 %v112_v2 }
  0x17   :  { %238 = vmatpush.msrb.mxu2 %v112_v2  ;;  %295 = vmatpush.msrb.mxu0 %v109_v5 }
  0x18   :  { %265 = vmatpush.msrb.mxu3 %v112_v2  ;;  %212 = vmatpush.msrb.mxu1 %v111_v3 }
  0x19   :  { %239 = vmatpush.msrb.mxu2 %v111_v3  ;;  %664 = vmatmul.msk.f32.gmra.mxu0 %vm72_vm1, %v66_v22  ;;  %v589_v22 = vld [vmem:[%s1001_s7 + $0x8] sm:$0xff] }
  0x1a   :  { %266 = vmatpush.msrb.mxu3 %v111_v3  ;;  %213 = vmatpush.msrb.mxu1 %v110_v4 }
  0x1b   :  { %240 = vmatpush.msrb.mxu2 %v110_v4  ;;  %415 = vmatpush.msra.mxu0 %v901_v34 }
  0x1c   :  { %267 = vmatpush.msrb.mxu3 %v110_v4  ;;  %214 = vmatpush.msrb.mxu1 %v109_v5 }
  0x1d   :  { %241 = vmatpush.msrb.mxu2 %v109_v5  ;;  %416 = vmatpush.msra.mxu0 %v903_v35 }
  0x1e   :  { %268 = vmatpush.msrb.mxu3 %v109_v5  ;;  %319 = vmatpush.msra.mxu1 %v112_v2 }
  0x1f   :  { %417 = vmatpush.msra.mxu0 %v907_v36 }
  0x20   :  { %320 = vmatpush.msra.mxu1 %v111_v3 }
  0x21   :  { %418 = vmatpush.msra.mxu0 %v913_v37 }
  0x22   :  { %321 = vmatpush.msra.mxu1 %v110_v4 }
  0x24   :  { %322 = vmatpush.msra.mxu1 %v109_v5 }
  0x8b   :  { %v100_v8 = vpop.f32.mrf.mxu0 }
  0x8c   :  { %v101_v9 = vadd.f32 %v689_v7, %v100_v8 }
  0x8e   :  { %107 = vst.msk [vmem:[#allocation2] sm:$0xff] %vm106_vm2, %v101_v9 }
  0x92   :  { %v134_v10 = vpop.f32.mrf.mxu1 }
  0x95   :  { %v113_v11 = vld [vmem:[#allocation2] sm:$0x3]  ;;  %v141_v14 = vld [vmem:[#allocation2 + $0x2] sm:$0x3]  ;;  %v168_v18 = vld [vmem:[#allocation2 + $0x4] sm:$0x3] }
  0x96   :  { %v137_v12 = vadd.f32 %v134_v10, %v113_v11  ;;  %v195_v27 = vld [vmem:[#allocation2 + $0x6] sm:$0x3]  ;;  %v103_v32 = vpop.f32.mrf.mxu0 }
  0x97   :  { %v104_v33 = vadd.f32 %v689_v7, %v103_v32 }
  0x98   :  { %691 = vtanh.f32 %v137_v12 }
  0x99   :  { %108 = vst.msk [vmem:[#allocation2 + $0x8] sm:$0xff] %vm106_vm2, %v104_v33 }
  0x9e   :  { %v692_v13 = vpop.eup %691 }
  0x9f   :  { %140 = vst.msk [vmem:[#allocation2] sm:$0x3] %vm139_vm3, %v692_v13  ;;  %665 = vmatmul.msk.f32.vlgmr.msra.gmra.mxu2 %vm106_vm2, %v692_v13 }
  0xa0   :  { %358 = vmatpush.msra.mxu2 %v335_v23  ;;  %v222_v38 = vld [vmem:[#allocation2 + $0x8] sm:$0x3]  ;;  %v249_v45 = vld [vmem:[#allocation2 + $0xa] sm:$0x3]  ;;  %v276_v53 = vld [vmem:[#allocation2 + $0xc] sm:$0x3] }
  0xa1   :  { %v303_v61 = vld [vmem:[#allocation2 + $0xe] sm:$0x3]  ;;  %v588_v23 = vld [vmem:[%s1001_s7] sm:$0xff] }
  0xa2   :  { %359 = vmatpush.msra.mxu2 %v334_v24 }
  0xa4   :  { %360 = vmatpush.msra.mxu2 %v333_v25 }
  0xa6   :  { %361 = vmatpush.msra.mxu2 %v332_v26 }
 0x122   :  { %v162_v15 = vpop.f32.mrf.mxu2 }
 0x123   :  { %v165_v16 = vadd.f32 %v162_v15, %v141_v14 }
 0x125   :  { %693 = vtanh.f32 %v165_v16 }
 0x12b   :  { %v694_v17 = vpop.eup %693 }
 0x12c   :  { %167 = vst.msk [vmem:[#allocation2 + $0x2] sm:$0x3] %vm139_vm3, %v694_v17  ;;  %666 = vmatmul.msk.f32.vlgmr.msra.gmra.mxu3 %vm106_vm2, %v694_v17 }
 0x12d   :  { %388 = vmatpush.msra.mxu3 %v901_v34 }
 0x12f   :  { %389 = vmatpush.msra.mxu3 %v903_v35 }
 0x131   :  { %390 = vmatpush.msra.mxu3 %v907_v36 }
 0x133   :  { %391 = vmatpush.msra.mxu3 %v913_v37 }
 0x1af   :  { %v189_v19 = vpop.f32.mrf.mxu3 }
 0x1b0   :  { %v192_v20 = vadd.f32 %v189_v19, %v168_v18 }
 0x1b2   :  { %695 = vtanh.f32 %v192_v20  ;;  %v591_v20 = vld [vmem:[%s1001_s7 + $0x18] sm:$0xff] }
 0x1b8   :  { %v696_v21 = vpop.eup %695 }
 0x1b9   :  { %194 = vst.msk [vmem:[#allocation2 + $0x4] sm:$0x3] %vm139_vm3, %v696_v21  ;;  %667 = vmatmul.msk.f32.vlgmr.msrb.gmra.mxu1 %vm106_vm2, %v696_v21  ;;  %v590_v21 = vld [vmem:[%s1001_s7 + $0x10] sm:$0xff] }
 0x1ba   :  { %442 = vmatpush.msrb.mxu1 %v901_v34 }
 0x1bc   :  { %443 = vmatpush.msrb.mxu1 %v903_v35 }
 0x1be   :  { %444 = vmatpush.msrb.mxu1 %v907_v36 }
 0x1c0   :  { %445 = vmatpush.msrb.mxu1 %v913_v37 }
 0x236   :  { %v216_v28 = vpop.f32.mrf.mxu1 }
 0x237   :  { %v219_v29 = vadd.f32 %v216_v28, %v195_v27 }
 0x239   :  { %697 = vtanh.f32 %v219_v29 }
 0x23f   :  { %v698_v30 = vpop.eup %697 }
 0x240   :  { %221 = vst.msk [vmem:[#allocation2 + $0x6] sm:$0x3] %vm139_vm3, %v698_v30  ;;  %668 = vmatmul.msk.f32.vlgmr.msrb.gmra.mxu2 %vm106_vm2, %v698_v30 }
 0x241   :  { %550 = vmatpush.msrb.mxu2 %v901_v34 }
 0x243   :  { %551 = vmatpush.msrb.mxu2 %v903_v35 }
 0x245   :  { %552 = vmatpush.msrb.mxu2 %v907_v36 }
 0x247   :  { %v330_v31 = vld [vmem:[#allocation2] sm:$0xff]  ;;  %553 = vmatpush.msrb.mxu2 %v913_v37 }
 0x248   :  { %672 = vmatmul.msk.f32.vlgmr.msra.gmra.mxu2 %vm106_vm2, %v330_v31  ;;  %v592_v31 = vld [vmem:[%s1002_s8] sm:$0x1] }
 0x2c3   :  { %v243_v39 = vpop.f32.mrf.mxu2 }
 0x2c4   :  { %v246_v40 = vadd.f32 %v243_v39, %v222_v38 }
 0x2c6   :  { %699 = vtanh.f32 %v246_v40 }
 0x2cb   :  { %v363_v42 = vpop.f32.mrf.mxu2 }
 0x2cc   :  { %v700_v43 = vpop.eup %699  ;;  %v364_v44 = vadd.f32 %v928_v41, %v363_v42 }
 0x2cd   :  { %248 = vst.msk [vmem:[#allocation2 + $0x8] sm:$0x3] %vm139_vm3, %v700_v43  ;;  %669 = vmatmul.msk.f32.vlgmr.msrb.gmra.mxu3 %vm106_vm2, %v700_v43 }
 0x2ce   :  { %369 = vst.msk [vmem:[#allocation2] sm:$0xff] %vm106_vm2, %v364_v44  ;;  %469 = vmatpush.msrb.mxu3 %v901_v34 }
 0x2d0   :  { %470 = vmatpush.msrb.mxu3 %v903_v35 }
 0x2d2   :  { %471 = vmatpush.msrb.mxu3 %v907_v36 }
 0x2d4   :  { %472 = vmatpush.msrb.mxu3 %v913_v37 }
 0x2d5   :  { %392 = vmatmul.f32.vlgmr.msra.gmra.mxu3 %v805_v6  ;;  %v375_v48 = vld [vmem:[#allocation2] sm:$0x3]  ;;  %v399_v56 = vld [vmem:[#allocation2 + $0x2] sm:$0x3]  ;;  %v426_v0 = vld [vmem:[#allocation2 + $0x4] sm:$0x3] }
 0x2d6   :  { %577 = vmatpush.msra.mxu3 %v901_v34  ;;  %v453_v7 = vld [vmem:[#allocation2 + $0x6] sm:$0x3] }
 0x2d8   :  { %578 = vmatpush.msra.mxu3 %v903_v35 }
 0x2da   :  { %579 = vmatpush.msra.mxu3 %v907_v36 }
 0x2dc   :  { %580 = vmatpush.msra.mxu3 %v913_v37 }
 0x350   :  { %v270_v46 = vpop.f32.mrf.mxu3 }
 0x351   :  { %v273_v47 = vadd.f32 %v270_v46, %v249_v45 }
 0x353   :  { %701 = vtanh.f32 %v273_v47 }
 0x358   :  { %v393_v49 = vpop.f32.mrf.mxu3 }
 0x359   :  { %v702_v50 = vpop.eup %701  ;;  %v396_v51 = vadd.f32 %v393_v49, %v375_v48 }
 0x35a   :  { %275 = vst.msk [vmem:[#allocation2 + $0xa] sm:$0x3] %vm139_vm3, %v702_v50  ;;  %670 = vmatmul.msk.f32.vlgmr.msrb.gmra.mxu0 %vm106_vm2, %v702_v50 }
 0x35b   :  { %703 = vtanh.f32 %v396_v51  ;;  %496 = vmatpush.msrb.mxu0 %v901_v34 }
 0x35d   :  { %497 = vmatpush.msrb.mxu0 %v903_v35 }
 0x35f   :  { %498 = vmatpush.msrb.mxu0 %v907_v36 }
 0x361   :  { %v704_v52 = vpop.eup %703  ;;  %499 = vmatpush.msrb.mxu0 %v913_v37 }
 0x362   :  { %398 = vst.msk [vmem:[#allocation2] sm:$0x3] %vm139_vm3, %v704_v52  ;;  %674 = vmatmul.msk.f32.vlgmr.msra.gmra.mxu0 %vm106_vm2, %v704_v52 }
 0x363   :  { %609 = vmatpush.msra.mxu0 %v591_v20 }
 0x365   :  { %610 = vmatpush.msra.mxu0 %v590_v21 }
 0x367   :  { %611 = vmatpush.msra.mxu0 %v589_v22 }
 0x369   :  { %612 = vmatpush.msra.mxu0 %v588_v23 }
 0x3d7   :  { %v297_v54 = vpop.f32.mrf.mxu0 }
 0x3d8   :  { %v300_v55 = vadd.f32 %v297_v54, %v276_v53 }
 0x3da   :  { %705 = vtanh.f32 %v300_v55 }
 0x3df   :  { %v420_v57 = vpop.f32.mrf.mxu0 }
 0x3e0   :  { %v706_v58 = vpop.eup %705  ;;  %v423_v59 = vadd.f32 %v420_v57, %v399_v56 }
 0x3e1   :  { %302 = vst.msk [vmem:[#allocation2 + $0xc] sm:$0x3] %vm139_vm3, %v706_v58  ;;  %671 = vmatmul.msk.f32.vlgmr.msra.gmra.mxu1 %vm106_vm2, %v706_v58 }
 0x3e2   :  { %707 = vtanh.f32 %v423_v59  ;;  %523 = vmatpush.msra.mxu1 %v901_v34 }
 0x3e4   :  { %524 = vmatpush.msra.mxu1 %v903_v35 }
 0x3e6   :  { %525 = vmatpush.msra.mxu1 %v907_v36 }
 0x3e8   :  { %v708_v60 = vpop.eup %707  ;;  %526 = vmatpush.msra.mxu1 %v913_v37 }
 0x3e9   :  { %425 = vst.msk [vmem:[#allocation2 + $0x2] sm:$0x3] %vm139_vm3, %v708_v60  ;;  %675 = vmatmul.msk.f32.vlgmr.msrb.gmra.mxu1 %vm106_vm2, %v708_v60 }
 0x3ea   :  { %635 = vmatpush.msrb.mxu1 %v591_v20 }
 0x3ec   :  { %636 = vmatpush.msrb.mxu1 %v590_v21 }
 0x3ee   :  { %637 = vmatpush.msrb.mxu1 %v589_v22 }
 0x3f0   :  { %638 = vmatpush.msrb.mxu1 %v588_v23 }
 0x45e   :  { %v324_v62 = vpop.f32.mrf.mxu1 }
 0x45f   :  { %v327_v63 = vadd.f32 %v324_v62, %v303_v61 }
 0x461   :  { %709 = vtanh.f32 %v327_v63 }
 0x466   :  { %v447_v1 = vpop.f32.mrf.mxu1 }
 0x467   :  { %v710_v2 = vpop.eup %709  ;;  %v450_v3 = vadd.f32 %v447_v1, %v426_v0 }
 0x468   :  { %329 = vst.msk [vmem:[#allocation2 + $0xe] sm:$0x3] %vm139_vm3, %v710_v2 }
 0x469   :  { %711 = vtanh.f32 %v450_v3 }
 0x46f   :  { %v712_v4 = vpop.eup %711  ;;  %v331_v5 = vld [vmem:[#allocation2 + $0x8] sm:$0xff] }
 0x470   :  { %452 = vst.msk [vmem:[#allocation2 + $0x4] sm:$0x3] %vm139_vm3, %v712_v4  ;;  %673 = vmatmul.msk.f32.gmra.mxu2 %vm106_vm2, %v331_v5  ;;  %676 = vmatmul.msk.f32.vlgmr.msrb.gmra.mxu3 %vm106_vm2, %v712_v4 }
 0x4f3   :  { %v366_v6 = vpop.f32.mrf.mxu2  ;;  %v474_v8 = vpop.f32.mrf.mxu3 }
 0x4f4   :  { %v367_v9 = vadd.f32 %v928_v41, %v366_v6  ;;  %v477_v10 = vadd.f32 %v474_v8, %v453_v7 }
 0x4f6   :  { %370 = vst.msk [vmem:[#allocation2 + $0x8] sm:$0xff] %vm106_vm2, %v367_v9  ;;  %713 = vtanh.f32 %v477_v10 }
 0x4fc   :  { %v714_v11 = vpop.eup %713 }
 0x4fd   :  { %479 = vst.msk [vmem:[#allocation2 + $0x6] sm:$0x3] %vm139_vm3, %v714_v11  ;;  %677 = vmatmul.msk.f32.vlgmr.msrb.gmra.mxu0 %vm106_vm2, %v714_v11  ;;  %v480_v12 = vld [vmem:[#allocation2 + $0x8] sm:$0x3]  ;;  %v507_v16 = vld [vmem:[#allocation2 + $0xa] sm:$0x3] }
 0x4fe   :  { %v534_v24 = vld [vmem:[#allocation2 + $0xc] sm:$0x3]  ;;  %v561_v29 = vld [vmem:[#allocation2 + $0xe] sm:$0x3] }
 0x57a   :  { %v501_v13 = vpop.f32.mrf.mxu0 }
 0x57b   :  { %v504_v14 = vadd.f32 %v501_v13, %v480_v12 }
 0x57d   :  { %715 = vtanh.f32 %v504_v14 }
 0x583   :  { %v716_v15 = vpop.eup %715 }
 0x584   :  { %506 = vst.msk [vmem:[#allocation2 + $0x8] sm:$0x3] %vm139_vm3, %v716_v15  ;;  %678 = vmatmul.msk.f32.vlgmr.msra.gmra.mxu1 %vm106_vm2, %v716_v15 }
 0x601   :  { %v528_v17 = vpop.f32.mrf.mxu1 }
 0x602   :  { %v531_v18 = vadd.f32 %v528_v17, %v507_v16 }
 0x604   :  { %717 = vtanh.f32 %v531_v18 }
 0x60a   :  { %v718_v19 = vpop.eup %717 }
 0x60b   :  { %533 = vst.msk [vmem:[#allocation2 + $0xa] sm:$0x3] %vm139_vm3, %v718_v19  ;;  %679 = vmatmul.msk.f32.vlgmr.msrb.gmra.mxu2 %vm106_vm2, %v718_v19 }
 0x68e   :  { %v555_v25 = vpop.f32.mrf.mxu2 }
 0x68f   :  { %v558_v26 = vadd.f32 %v555_v25, %v534_v24 }
 0x691   :  { %719 = vtanh.f32 %v558_v26 }
 0x697   :  { %v720_v27 = vpop.eup %719 }
 0x698   :  { %560 = vst.msk [vmem:[#allocation2 + $0xc] sm:$0x3] %vm139_vm3, %v720_v27  ;;  %680 = vmatmul.msk.f32.vlgmr.msra.gmra.mxu3 %vm106_vm2, %v720_v27 }
 0x69f   :  { %v593_v28 = vld [vmem:[#allocation2 + $0xd] sm:$0x1] }
 0x6a0   :  { %681 = vmatmul.msk.f32.vlgmr.msra.gmra.mxu0 %vm106_vm2, %v593_v28 }
 0x71b   :  { %v582_v30 = vpop.f32.mrf.mxu3 }
 0x71c   :  { %v585_v32 = vadd.f32 %v582_v30, %v561_v29 }
 0x71d   :  { %v614_v33 = vpop.f32.mrf.mxu0 }
 0x71e   :  { %721 = vtanh.f32 %v585_v32  ;;  %v615_v34 = vadd.f32 %v614_v33, %v592_v31 }
 0x720   :  { %618 = vst.msk [vmem:[#allocation8] sm:$0x1] %vm617_vm4, %v615_v34 }
 0x724   :  { %v722_v35 = vpop.eup %721 }
 0x725   :  { %587 = vst.msk [vmem:[#allocation2 + $0xe] sm:$0x3] %vm139_vm3, %v722_v35 }
 0x72c   :  { %v619_v36 = vld [vmem:[#allocation2 + $0xf] sm:$0x1] }
 0x72d   :  { %682 = vmatmul.msk.f32.vlgmr.msrb.gmra.mxu1 %vm106_vm2, %v619_v36 }
 0x7aa   :  { %v640_v37 = vpop.f32.mrf.mxu1 }
 0x7ab   :  { %v641_v38 = vadd.f32 %v640_v37, %v592_v31 }
 0x7ad   :  { %643 = vst.msk [vmem:[#allocation8 + $0x1] sm:$0x1] %vm617_vm4, %v641_v38 }
 0x7ae   :  { %654 = dma.vmem_to_hbm [thread:$0]  %s650_s4, 32, %s652_s6, [#allocation5]  }
 0x7af   :  { %799 = dma.done.wait [#allocation5], 32  }
 0x7b0   :  { %800 = vsyncadd [#allocation5], 4294967264 }
 0x7b1   :  { %659 = vsyncpa [#allocation4], 1 }
 0x7b2   :  { %660 = vsyncpa [#allocation7], 1 }
 0x7b3   :  { %661 = vsyncpa [#allocation5], 1 }

</bundles_post_ra>
